<compile_context>
chip_gen: v5e
topology: v5e:2x2
jax: 0.10.0
libtpu: 0.0.40
codegen_flags: <defaults>
</compile_context>

<pallas_src>
import numpy as np

import jax
import jax.numpy as jnp
from jax.experimental import pallas as pl
from jax.experimental.pallas import tpu as pltpu


# ------------------------------ fused kernel -------------------------------- #

def _make_kernel(img_size, b_tile, ds):
    h_outs = [img_size // 2 ** (i + 1) for i in range(4)]   # per-image output heights

    def kernel(x_ref, w1_ref, w234_ref, eps_ref, wh_ref, bh_ref, o_ref,
               s1_ref, s2_ref, s3_ref, s4_ref):
        eps_all = eps_ref[...]            # (4, 3, 8*img) f32: [bias; bn scale; bn shift]
        wh = wh_ref[...]                  # (ds, ds*128) f32 packed head weight

        def conv_block(src_ref, get_w, eps, h_out, dst_ref):
            m_out = dst_ref.shape[0]                         # = b_tile * h_out
            lanes_in = src_ref.shape[-1]
            # Stride-2 row gather straight from VMEM (no RowSel matmul).
            t1 = src_ref[pl.ds(0, m_out, stride=2), :]       # kh=1: input rows 2j
            t2 = src_ref[pl.ds(1, m_out, stride=2), :]       # kh=2: input rows 2j+1
            y = jnp.dot(t1.astype(jnp.bfloat16), get_w(1),
                        preferred_element_type=jnp.float32)
            y = y + jnp.dot(t2.astype(jnp.bfloat16), get_w(2),
                            preferred_element_type=jnp.float32)
            if h_out > 1:
                # kh=0 needs rows 2j-1: shift t2 down one output row and zero the
                # first output row of every image (top zero-padding of the conv).
                t0 = jnp.concatenate(
                    [jnp.zeros((1, lanes_in), jnp.float32), t2[:m_out - 1, :]],
                    axis=0)
                row = jax.lax.broadcasted_iota(jnp.int32, (m_out, 1), 0)
                t0 = jnp.where(row % h_out == 0, 0.0, t0)
                y = y + jnp.dot(t0.astype(jnp.bfloat16), get_w(0),
                                preferred_element_type=jnp.float32)
            # (h_out == 1: the kh=0 tap always hits the padding row -> skip it.)
            y = y + eps[0:1, :]                   # conv bias (per (w, c) lane)
            y = jnp.maximum(y, 0.2 * y)           # LeakyReLU(0.2)
            # Dropout2d(0.25) is identity in eval mode.
            # TODO(synk): training-mode per-channel dropout not implemented.
            y = y * eps[1:2, :] + eps[2:3, :]     # BatchNorm2d(eps=0.8) folded affine
            dst_ref[...] = y

        conv_block(x_ref,  lambda kh: w1_ref[kh],        eps_all[0], h_outs[0], s1_ref)
        conv_block(s1_ref, lambda kh: w234_ref[kh],      eps_all[1], h_outs[1], s2_ref)
        conv_block(s2_ref, lambda kh: w234_ref[3 + kh],  eps_all[2], h_outs[2], s3_ref)
        conv_block(s3_ref, lambda kh: w234_ref[6 + kh],  eps_all[3], h_outs[3], s4_ref)

        # Linear(128*ds^2 -> 1) + Sigmoid head: elementwise multiply per spatial
        # row + a single lane reduction (torch NCHW-flatten folded into wh).
        acc = jnp.zeros((b_tile, wh.shape[1]), jnp.float32)
        for hh in range(ds):
            xh = s4_ref[pl.ds(hh, b_tile, stride=ds), :]     # rows b*ds + hh, all b
            acc = acc + xh * wh[hh:hh + 1, :]
        logit = jnp.sum(acc, axis=1, keepdims=True) + bh_ref[...]
        o_ref[...] = 0.5 * (jnp.tanh(0.5 * logit) + 1.0)     # stable sigmoid

    return kernel


# --------------------------- host-side weight packing ----------------------- #

def _pack_conv_weight(wt, w_in):
    """(Cout, Cin, 3, 3) conv weight -> (3, W_in*Cin, W_out*Cout) block-banded mats.

    BigW[kh] maps input lanes (w, cin) to output lanes (wo, cout), performing the
    kw taps, the W zero-padding and the channel contraction in one matmul."""
    cout, cin = wt.shape[0], wt.shape[1]
    w_out = w_in // 2
    big = np.zeros((3, w_in * cin, w_out * cout), np.float32)
    for kh in range(3):
        for j in range(w_out):
            for kw in range(3):
                w = 2 * j + kw - 1
                if 0 <= w < w_in:
                    big[kh, w * cin:(w + 1) * cin, j * cout:(j + 1) * cout] = \
                        wt[:, :, kh, kw].T                    # (Cin, Cout)
    return big


def init_params(key, channels, img_size):
    """Torch-style init, packed once into the fused-kernel layout.
    Returns (packed_params, raw_params) — raw is only used by the JAX reference."""
    assert img_size % 16 == 0, "img_size must be divisible by 2**4"
    chans = [channels, 16, 32, 64, 128]
    use_bn = [False, True, True, True]
    sizes = [img_size // (2 ** i) for i in range(5)]

    bigws, eps_rows, raw_convs = [], [], []
    for i in range(4):
        cin, cout = chans[i], chans[i + 1]
        w_in, w_out = sizes[i], sizes[i + 1]
        key, k1, k2, k3, k4 = jax.random.split(key, 5)
        bound = 1.0 / float(np.sqrt(cin * 9))
        wt = np.asarray(jax.random.uniform(k1, (cout, cin, 3, 3), jnp.float32,
                                           -bound, bound))
        b = np.asarray(jax.random.uniform(k2, (cout,), jnp.float32, -bound, bound))
        if use_bn[i]:
            # BatchNorm2d(cout, 0.8): eps=0.8; eval mode -> fold running stats.
            gamma = 1.0 + 0.1 * np.asarray(jax.random.normal(k3, (cout,), jnp.float32))
            beta = 0.1 * np.asarray(jax.random.normal(k4, (cout,), jnp.float32))
            running_mean = np.zeros((cout,), np.float32)
            running_var = np.ones((cout,), np.float32)
            scale = (gamma / np.sqrt(running_var + 0.8)).astype(np.float32)
            shift = (beta - running_mean * scale).astype(np.float32)
        else:
            scale = np.ones((cout,), np.float32)
            shift = np.zeros((cout,), np.float32)

        raw_convs.append((jnp.asarray(wt), jnp.asarray(b),
                          jnp.asarray(scale), jnp.asarray(shift)))
        bigws.append(_pack_conv_weight(wt, w_in))
        eps_rows.append(np.stack([np.tile(b, w_out),
                                  np.tile(scale, w_out),
                                  np.tile(shift, w_out)]).astype(np.float32))

    bigw1 = jnp.asarray(bigws[0], jnp.bfloat16)                           # (3, W*Cin, 8*img)
    bigw234 = jnp.asarray(np.concatenate(bigws[1:], axis=0), jnp.bfloat16)  # (9, 8*img, 8*img)
    eps_all = jnp.asarray(np.stack(eps_rows, axis=0))                     # (4, 3, 8*img)

    ds = img_size // 16
    feat = 128 * ds * ds
    key, k1, k2 = jax.random.split(key, 3)
    bound = 1.0 / float(np.sqrt(feat))
    w_lin = np.asarray(jax.random.uniform(k1, (1, feat), jnp.float32, -bound, bound))
    b_lin = np.asarray(jax.random.uniform(k2, (1,), jnp.float32, -bound, bound))
    # Fold torch's NCHW flatten order into the kernel's (h, w*c) lane layout.
    w_chw = w_lin[0].reshape(128, ds, ds)
    w_head = np.zeros((ds, ds * 128), np.float32)
    for hh in range(ds):
        for ww in range(ds):
            w_head[hh, ww * 128:(ww + 1) * 128] = w_chw[:, hh, ww]
    w_head = jnp.asarray(w_head)
    b_head = jnp.asarray(b_lin.reshape(1, 1).astype(np.float32))

    packed = (bigw1, bigw234, eps_all, w_head, b_head)
    raw = {"conv": raw_convs, "head": (jnp.asarray(w_lin), jnp.asarray(b_lin))}
    return packed, raw


# --------------------------------- forward ---------------------------------- #

def discriminator_forward(img, params, b_tile=8):
    bigw1, bigw234, eps_all, w_head, b_head = params
    n, c, h, w = img.shape
    ds = h // 16
    l_out = 8 * h                                   # Wo*Cout, same for all 4 layers

    n_pad = -(-n // b_tile) * b_tile
    if n_pad != n:
        img = jnp.pad(img, ((0, n_pad - n), (0, 0), (0, 0), (0, 0)))
    # NCHW -> (N*H, W*C) channels-last slab (single relayout outside the kernel).
    x2d = jnp.transpose(img, (0, 2, 3, 1)).reshape(n_pad * h, w * c)

    kernel = _make_kernel(h, b_tile, ds)
    scratch_rows = [b_tile * (h // 2 ** (i + 1)) for i in range(4)]
    scratch_shapes = [pltpu.VMEM((r, l_out), jnp.float32) for r in scratch_rows]

    def nbytes(a):
        return int(np.prod(a.shape)) * a.dtype.itemsize

    weight_bytes = sum(nbytes(a) for a in (bigw1, bigw234, eps_all, w_head, b_head))
    block_bytes = b_tile * h * w * c * 4 + b_tile * 4
    need = 2 * (weight_bytes + block_bytes) \
        + sum(r * l_out * 4 for r in scratch_rows) + (4 << 20)
    vmem_limit = int(min(max(need, 8 << 20), 64 << 20))

    out = pl.pallas_call(
        kernel,
        out_shape=jax.ShapeDtypeStruct((n_pad, 1), jnp.float32),
        grid=(n_pad // b_tile,),
        in_specs=[
            pl.BlockSpec((b_tile * h, w * c), lambda i: (i, 0)),
            pl.BlockSpec(bigw1.shape, lambda i: (0, 0, 0)),
            pl.BlockSpec(bigw234.shape, lambda i: (0, 0, 0)),
            pl.BlockSpec(eps_all.shape, lambda i: (0, 0, 0)),
            pl.BlockSpec(w_head.shape, lambda i: (0, 0)),
            pl.BlockSpec(b_head.shape, lambda i: (0, 0)),
        ],
        out_specs=pl.BlockSpec((b_tile, 1), lambda i: (i, 0)),
        scratch_shapes=scratch_shapes,
        compiler_params=pltpu.CompilerParams(
            dimension_semantics=("parallel",),
            vmem_limit_bytes=vmem_limit),
    )(x2d, bigw1, bigw234, eps_all, w_head, b_head)
    return out[:n]


# ------------------------------ JAX reference -------------------------------- #

def _reference_forward(img, raw):
    x = img
    for wt, b, scale, shift in raw["conv"]:
        x = jax.lax.conv_general_dilated(
            x, wt, window_strides=(2, 2), padding=((1, 1), (1, 1)),
            dimension_numbers=("NCHW", "OIHW", "NCHW"))
        x = x + b[None, :, None, None]
        x = jnp.where(x >= 0, x, 0.2 * x)
        x = x * scale[None, :, None, None] + shift[None, :, None, None]
    w_lin, b_lin = raw["head"]
    flat = x.reshape(x.shape[0], -1)
    return jax.nn.sigmoid(flat @ w_lin.T + b_lin)


# ---------------------------------- main ------------------------------------ #

if __name__ == "__main__":
    batch, channels, img_size = 2, 4, 16

    key = jax.random.PRNGKey(0)
    key, k_img = jax.random.split(key)
    img = jax.random.normal(k_img, (batch, channels, img_size, img_size), jnp.float32)

    params, raw = init_params(key, channels, img_size)

    fwd = jax.jit(discriminator_forward)
    validity = jax.block_until_ready(fwd(img, params))

    assert validity.shape == (batch, 1)
    assert bool(jnp.all((validity >= 0.0) & (validity <= 1.0)))

    ref = _reference_forward(img, raw)
    max_err = float(jnp.max(jnp.abs(validity - ref)))
    assert max_err < 3e-2, f"mismatch vs reference: {max_err}"

    print("KERNEL_OK")
</pallas_src>

<mosaic_0001>
module attributes {stable_mosaic.version = 11 : i64} {
  func.func @kernel(%arg0: i32, %arg1: memref<128x64xf32, #tpu.memory_space<vmem>>, %arg2: memref<3x64x128xbf16, #tpu.memory_space<vmem>>, %arg3: memref<9x128x128xbf16, #tpu.memory_space<vmem>>, %arg4: memref<4x3x128xf32, #tpu.memory_space<vmem>>, %arg5: memref<1x128xf32, #tpu.memory_space<vmem>>, %arg6: memref<1x1xf32, #tpu.memory_space<vmem>>, %arg7: memref<8x1xf32, #tpu.memory_space<vmem>>, %arg8: memref<64x128xf32, #tpu.memory_space<vmem>>, %arg9: memref<32x128xf32, #tpu.memory_space<vmem>>, %arg10: memref<16x128xf32, #tpu.memory_space<vmem>>, %arg11: memref<8x128xf32, #tpu.memory_space<vmem>>) attributes {dimension_semantics = [#tpu.dimension_semantics<parallel>], iteration_bounds = array<i64: 1>, scalar_prefetch = 0 : i64, scratch_operands = 4 : i64, tpu.core_type = #tpu.core_type<tc>, window_params = [{transform_indices = @transform_0, window_bounds = array<i64: 128, 64>}, {pipeline_mode = #tpu.pipeline_mode<synchronous>, transform_indices = @transform_1, window_bounds = array<i64: 3, 64, 128>}, {pipeline_mode = #tpu.pipeline_mode<synchronous>, transform_indices = @transform_2, window_bounds = array<i64: 9, 128, 128>}, {pipeline_mode = #tpu.pipeline_mode<synchronous>, transform_indices = @transform_3, window_bounds = array<i64: 4, 3, 128>}, {pipeline_mode = #tpu.pipeline_mode<synchronous>, transform_indices = @transform_4, window_bounds = array<i64: 1, 128>}, {pipeline_mode = #tpu.pipeline_mode<synchronous>, transform_indices = @transform_5, window_bounds = array<i64: 1, 1>}, {transform_indices = @transform_6, window_bounds = array<i64: 8, 1>}]} {
    %c0 = arith.constant 0 : index
    %c0_0 = arith.constant 0 : index
    %c0_1 = arith.constant 0 : index
    %0 = vector.load %arg4[%c0, %c0_0, %c0_1] : memref<4x3x128xf32, #tpu.memory_space<vmem>>, vector<4x3x128xf32>
    %c0_2 = arith.constant 0 : index
    %c0_3 = arith.constant 0 : index
    %1 = vector.load %arg5[%c0_2, %c0_3] : memref<1x128xf32, #tpu.memory_space<vmem>>, vector<1x128xf32>
    %2 = vector.extract_strided_slice %0 {offsets = [0, 0, 0], sizes = [1, 3, 128], strides = [1, 1, 1]} : vector<4x3x128xf32> to vector<1x3x128xf32>
    %3 = vector.shape_cast %2 : vector<1x3x128xf32> to vector<3x128xf32>
    %c0_4 = arith.constant 0 : index
    %c0_5 = arith.constant 0 : index
    %4 = tpu.strided_load %arg1[%c0_4, %c0_5] {strides = array<i32: 2, 1>} : memref<128x64xf32, #tpu.memory_space<vmem>>, vector<64x64xf32>
    %c1 = arith.constant 1 : index
    %c0_6 = arith.constant 0 : index
    %5 = tpu.strided_load %arg1[%c1, %c0_6] {strides = array<i32: 2, 1>} : memref<128x64xf32, #tpu.memory_space<vmem>>, vector<64x64xf32>
    %6 = arith.truncf %4 : vector<64x64xf32> to vector<64x64xbf16>
    %c1_7 = arith.constant 1 : index
    %c0_8 = arith.constant 0 : index
    %c0_9 = arith.constant 0 : index
    %7 = vector.load %arg2[%c1_7, %c0_8, %c0_9] : memref<3x64x128xbf16, #tpu.memory_space<vmem>>, vector<1x64x128xbf16>
    %8 = vector.shape_cast %7 : vector<1x64x128xbf16> to vector<64x128xbf16>
    %cst = arith.constant dense<0.000000e+00> : vector<64x128xf32>
    %9 = tpu.matmul %6, %8, %cst {dimension_numbers = #tpu.dot_dimension_numbers<[1], [0], [0], [1], [0, 0, 1, 1], [], []>} : vector<64x64xbf16>, vector<64x128xbf16>, vector<64x128xf32> -> vector<64x128xf32>
    %10 = arith.truncf %5 : vector<64x64xf32> to vector<64x64xbf16>
    %c2 = arith.constant 2 : index
    %c0_10 = arith.constant 0 : index
    %c0_11 = arith.constant 0 : index
    %11 = vector.load %arg2[%c2, %c0_10, %c0_11] : memref<3x64x128xbf16, #tpu.memory_space<vmem>>, vector<1x64x128xbf16>
    %12 = vector.shape_cast %11 : vector<1x64x128xbf16> to vector<64x128xbf16>
    %cst_12 = arith.constant dense<0.000000e+00> : vector<64x128xf32>
    %13 = tpu.matmul %10, %12, %cst_12 {dimension_numbers = #tpu.dot_dimension_numbers<[1], [0], [0], [1], [0, 0, 1, 1], [], []>} : vector<64x64xbf16>, vector<64x128xbf16>, vector<64x128xf32> -> vector<64x128xf32>
    %14 = arith.addf %9, %13 : vector<64x128xf32>
    %cst_13 = arith.constant 0.000000e+00 : f32
    %15 = vector.broadcast %cst_13 : f32 to vector<1x64xf32>
    %16 = vector.extract_strided_slice %5 {offsets = [0, 0], sizes = [63, 64], strides = [1, 1]} : vector<64x64xf32> to vector<63x64xf32>
    %17 = tpu.concatenate %15, %16 in 0 : vector<1x64xf32>, vector<63x64xf32> -> vector<64x64xf32>
    %18 = tpu.iota {dimensions = array<i32: 0>} : vector<64x1xi32>
    %c8_i32 = arith.constant 8 : i32
    %c0_i32 = arith.constant 0 : i32
    %19 = arith.cmpi eq, %c8_i32, %c0_i32 : i32
    %c1_i32 = arith.constant 1 : i32
    %20 = arith.select %19, %c1_i32, %c8_i32 : i32
    %21 = vector.broadcast %20 : i32 to vector<64x1xi32>
    %22 = arith.remsi %18, %21 : vector<64x1xi32>
    %c0_i32_14 = arith.constant 0 : i32
    %23 = vector.broadcast %c0_i32_14 : i32 to vector<64x1xi32>
    %24 = arith.cmpi ne, %22, %23 : vector<64x1xi32>
    %c0_i32_15 = arith.constant 0 : i32
    %25 = vector.broadcast %c0_i32_15 : i32 to vector<64x1xi32>
    %26 = arith.cmpi slt, %22, %25 : vector<64x1xi32>
    %c0_i32_16 = arith.constant 0 : i32
    %27 = arith.cmpi slt, %20, %c0_i32_16 : i32
    %28 = vector.broadcast %27 : i1 to vector<64x1xi1>
    %29 = vector.broadcast %28 : vector<64x1xi1> to vector<64x1xi1>
    %30 = arith.xori %26, %29 : vector<64x1xi1>
    %31 = arith.andi %30, %24 : vector<64x1xi1>
    %32 = vector.broadcast %20 : i32 to vector<64x1xi32>
    %33 = arith.addi %22, %32 : vector<64x1xi32>
    %34 = arith.select %31, %33, %22 : vector<64x1xi1>, vector<64x1xi32>
    %c0_i32_17 = arith.constant 0 : i32
    %35 = vector.broadcast %c0_i32_17 : i32 to vector<64x1xi32>
    %36 = arith.cmpi eq, %34, %35 : vector<64x1xi32>
    %cst_18 = arith.constant 0.000000e+00 : f32
    %37 = vector.shape_cast %36 : vector<64x1xi1> to vector<64x1xi1>
    %38 = vector.broadcast %37 : vector<64x1xi1> to vector<64x64xi1>
    %39 = vector.broadcast %cst_18 : f32 to vector<64x64xf32>
    %40 = arith.select %38, %39, %17 : vector<64x64xi1>, vector<64x64xf32>
    %41 = arith.truncf %40 : vector<64x64xf32> to vector<64x64xbf16>
    %c0_19 = arith.constant 0 : index
    %c0_20 = arith.constant 0 : index
    %c0_21 = arith.constant 0 : index
    %42 = vector.load %arg2[%c0_19, %c0_20, %c0_21] : memref<3x64x128xbf16, #tpu.memory_space<vmem>>, vector<1x64x128xbf16>
    %43 = vector.shape_cast %42 : vector<1x64x128xbf16> to vector<64x128xbf16>
    %cst_22 = arith.constant dense<0.000000e+00> : vector<64x128xf32>
    %44 = tpu.matmul %41, %43, %cst_22 {dimension_numbers = #tpu.dot_dimension_numbers<[1], [0], [0], [1], [0, 0, 1, 1], [], []>} : vector<64x64xbf16>, vector<64x128xbf16>, vector<64x128xf32> -> vector<64x128xf32>
    %45 = arith.addf %14, %44 : vector<64x128xf32>
    %46 = vector.extract_strided_slice %3 {offsets = [0, 0], sizes = [1, 128], strides = [1, 1]} : vector<3x128xf32> to vector<1x128xf32>
    %47 = vector.broadcast %46 : vector<1x128xf32> to vector<64x128xf32>
    %48 = arith.addf %45, %47 : vector<64x128xf32>
    %cst_23 = arith.constant 2.000000e-01 : f32
    %49 = vector.broadcast %cst_23 : f32 to vector<64x128xf32>
    %50 = arith.mulf %49, %48 : vector<64x128xf32>
    %51 = arith.maximumf %48, %50 : vector<64x128xf32>
    %52 = vector.extract_strided_slice %3 {offsets = [1, 0], sizes = [1, 128], strides = [1, 1]} : vector<3x128xf32> to vector<1x128xf32>
    %53 = vector.broadcast %52 : vector<1x128xf32> to vector<64x128xf32>
    %54 = arith.mulf %51, %53 : vector<64x128xf32>
    %55 = vector.extract_strided_slice %3 {offsets = [2, 0], sizes = [1, 128], strides = [1, 1]} : vector<3x128xf32> to vector<1x128xf32>
    %56 = vector.broadcast %55 : vector<1x128xf32> to vector<64x128xf32>
    %57 = arith.addf %54, %56 : vector<64x128xf32>
    %c0_24 = arith.constant 0 : index
    %c0_25 = arith.constant 0 : index
    %58 = vector.load %arg8[%c0_24, %c0_25] : memref<64x128xf32, #tpu.memory_space<vmem>>, vector<64x128xf32>
    tpu.vector_store %arg8[%c0_24, %c0_25], %57 {strides = array<i32>} : memref<64x128xf32, #tpu.memory_space<vmem>>, vector<64x128xf32>,
    %59 = vector.extract_strided_slice %0 {offsets = [1, 0, 0], sizes = [1, 3, 128], strides = [1, 1, 1]} : vector<4x3x128xf32> to vector<1x3x128xf32>
    %60 = vector.shape_cast %59 : vector<1x3x128xf32> to vector<3x128xf32>
    %c0_26 = arith.constant 0 : index
    %c0_27 = arith.constant 0 : index
    %61 = tpu.strided_load %arg8[%c0_26, %c0_27] {strides = array<i32: 2, 1>} : memref<64x128xf32, #tpu.memory_space<vmem>>, vector<32x128xf32>
    %c1_28 = arith.constant 1 : index
    %c0_29 = arith.constant 0 : index
    %62 = tpu.strided_load %arg8[%c1_28, %c0_29] {strides = array<i32: 2, 1>} : memref<64x128xf32, #tpu.memory_space<vmem>>, vector<32x128xf32>
    %63 = arith.truncf %61 : vector<32x128xf32> to vector<32x128xbf16>
    %c1_30 = arith.constant 1 : index
    %c0_31 = arith.constant 0 : index
    %c0_32 = arith.constant 0 : index
    %64 = vector.load %arg3[%c1_30, %c0_31, %c0_32] : memref<9x128x128xbf16, #tpu.memory_space<vmem>>, vector<1x128x128xbf16>
    %65 = vector.shape_cast %64 : vector<1x128x128xbf16> to vector<128x128xbf16>
    %cst_33 = arith.constant dense<0.000000e+00> : vector<32x128xf32>
    %66 = tpu.matmul %63, %65, %cst_33 {dimension_numbers = #tpu.dot_dimension_numbers<[1], [0], [0], [1], [0, 0, 1, 1], [], []>} : vector<32x128xbf16>, vector<128x128xbf16>, vector<32x128xf32> -> vector<32x128xf32>
    %67 = arith.truncf %62 : vector<32x128xf32> to vector<32x128xbf16>
    %c2_34 = arith.constant 2 : index
    %c0_35 = arith.constant 0 : index
    %c0_36 = arith.constant 0 : index
    %68 = vector.load %arg3[%c2_34, %c0_35, %c0_36] : memref<9x128x128xbf16, #tpu.memory_space<vmem>>, vector<1x128x128xbf16>
    %69 = vector.shape_cast %68 : vector<1x128x128xbf16> to vector<128x128xbf16>
    %cst_37 = arith.constant dense<0.000000e+00> : vector<32x128xf32>
    %70 = tpu.matmul %67, %69, %cst_37 {dimension_numbers = #tpu.dot_dimension_numbers<[1], [0], [0], [1], [0, 0, 1, 1], [], []>} : vector<32x128xbf16>, vector<128x128xbf16>, vector<32x128xf32> -> vector<32x128xf32>
    %71 = arith.addf %66, %70 : vector<32x128xf32>
    %cst_38 = arith.constant 0.000000e+00 : f32
    %72 = vector.broadcast %cst_38 : f32 to vector<1x128xf32>
    %73 = vector.extract_strided_slice %62 {offsets = [0, 0], sizes = [31, 128], strides = [1, 1]} : vector<32x128xf32> to vector<31x128xf32>
    %74 = tpu.concatenate %72, %73 in 0 : vector<1x128xf32>, vector<31x128xf32> -> vector<32x128xf32>
    %75 = tpu.iota {dimensions = array<i32: 0>} : vector<32x1xi32>
    %c4_i32 = arith.constant 4 : i32
    %c0_i32_39 = arith.constant 0 : i32
    %76 = arith.cmpi eq, %c4_i32, %c0_i32_39 : i32
    %c1_i32_40 = arith.constant 1 : i32
    %77 = arith.select %76, %c1_i32_40, %c4_i32 : i32
    %78 = vector.broadcast %77 : i32 to vector<32x1xi32>
    %79 = arith.remsi %75, %78 : vector<32x1xi32>
    %c0_i32_41 = arith.constant 0 : i32
    %80 = vector.broadcast %c0_i32_41 : i32 to vector<32x1xi32>
    %81 = arith.cmpi ne, %79, %80 : vector<32x1xi32>
    %c0_i32_42 = arith.constant 0 : i32
    %82 = vector.broadcast %c0_i32_42 : i32 to vector<32x1xi32>
    %83 = arith.cmpi slt, %79, %82 : vector<32x1xi32>
    %c0_i32_43 = arith.constant 0 : i32
    %84 = arith.cmpi slt, %77, %c0_i32_43 : i32
    %85 = vector.broadcast %84 : i1 to vector<32x1xi1>
    %86 = vector.broadcast %85 : vector<32x1xi1> to vector<32x1xi1>
    %87 = arith.xori %83, %86 : vector<32x1xi1>
    %88 = arith.andi %87, %81 : vector<32x1xi1>
    %89 = vector.broadcast %77 : i32 to vector<32x1xi32>
    %90 = arith.addi %79, %89 : vector<32x1xi32>
    %91 = arith.select %88, %90, %79 : vector<32x1xi1>, vector<32x1xi32>
    %c0_i32_44 = arith.constant 0 : i32
    %92 = vector.broadcast %c0_i32_44 : i32 to vector<32x1xi32>
    %93 = arith.cmpi eq, %91, %92 : vector<32x1xi32>
    %cst_45 = arith.constant 0.000000e+00 : f32
    %94 = vector.shape_cast %93 : vector<32x1xi1> to vector<32x1xi1>
    %95 = vector.broadcast %94 : vector<32x1xi1> to vector<32x128xi1>
    %96 = vector.broadcast %cst_45 : f32 to vector<32x128xf32>
    %97 = arith.select %95, %96, %74 : vector<32x128xi1>, vector<32x128xf32>
    %98 = arith.truncf %97 : vector<32x128xf32> to vector<32x128xbf16>
    %c0_46 = arith.constant 0 : index
    %c0_47 = arith.constant 0 : index
    %c0_48 = arith.constant 0 : index
    %99 = vector.load %arg3[%c0_46, %c0_47, %c0_48] : memref<9x128x128xbf16, #tpu.memory_space<vmem>>, vector<1x128x128xbf16>
    %100 = vector.shape_cast %99 : vector<1x128x128xbf16> to vector<128x128xbf16>
    %cst_49 = arith.constant dense<0.000000e+00> : vector<32x128xf32>
    %101 = tpu.matmul %98, %100, %cst_49 {dimension_numbers = #tpu.dot_dimension_numbers<[1], [0], [0], [1], [0, 0, 1, 1], [], []>} : vector<32x128xbf16>, vector<128x128xbf16>, vector<32x128xf32> -> vector<32x128xf32>
    %102 = arith.addf %71, %101 : vector<32x128xf32>
    %103 = vector.extract_strided_slice %60 {offsets = [0, 0], sizes = [1, 128], strides = [1, 1]} : vector<3x128xf32> to vector<1x128xf32>
    %104 = vector.broadcast %103 : vector<1x128xf32> to vector<32x128xf32>
    %105 = arith.addf %102, %104 : vector<32x128xf32>
    %cst_50 = arith.constant 2.000000e-01 : f32
    %106 = vector.broadcast %cst_50 : f32 to vector<32x128xf32>
    %107 = arith.mulf %106, %105 : vector<32x128xf32>
    %108 = arith.maximumf %105, %107 : vector<32x128xf32>
    %109 = vector.extract_strided_slice %60 {offsets = [1, 0], sizes = [1, 128], strides = [1, 1]} : vector<3x128xf32> to vector<1x128xf32>
    %110 = vector.broadcast %109 : vector<1x128xf32> to vector<32x128xf32>
    %111 = arith.mulf %108, %110 : vector<32x128xf32>
    %112 = vector.extract_strided_slice %60 {offsets = [2, 0], sizes = [1, 128], strides = [1, 1]} : vector<3x128xf32> to vector<1x128xf32>
    %113 = vector.broadcast %112 : vector<1x128xf32> to vector<32x128xf32>
    %114 = arith.addf %111, %113 : vector<32x128xf32>
    %c0_51 = arith.constant 0 : index
    %c0_52 = arith.constant 0 : index
    %115 = vector.load %arg9[%c0_51, %c0_52] : memref<32x128xf32, #tpu.memory_space<vmem>>, vector<32x128xf32>
    tpu.vector_store %arg9[%c0_51, %c0_52], %114 {strides = array<i32>} : memref<32x128xf32, #tpu.memory_space<vmem>>, vector<32x128xf32>,
    %116 = vector.extract_strided_slice %0 {offsets = [2, 0, 0], sizes = [1, 3, 128], strides = [1, 1, 1]} : vector<4x3x128xf32> to vector<1x3x128xf32>
    %117 = vector.shape_cast %116 : vector<1x3x128xf32> to vector<3x128xf32>
    %c0_53 = arith.constant 0 : index
    %c0_54 = arith.constant 0 : index
    %118 = tpu.strided_load %arg9[%c0_53, %c0_54] {strides = array<i32: 2, 1>} : memref<32x128xf32, #tpu.memory_space<vmem>>, vector<16x128xf32>
    %c1_55 = arith.constant 1 : index
    %c0_56 = arith.constant 0 : index
    %119 = tpu.strided_load %arg9[%c1_55, %c0_56] {strides = array<i32: 2, 1>} : memref<32x128xf32, #tpu.memory_space<vmem>>, vector<16x128xf32>
    %120 = arith.truncf %118 : vector<16x128xf32> to vector<16x128xbf16>
    %c4 = arith.constant 4 : index
    %c0_57 = arith.constant 0 : index
    %c0_58 = arith.constant 0 : index
    %121 = vector.load %arg3[%c4, %c0_57, %c0_58] : memref<9x128x128xbf16, #tpu.memory_space<vmem>>, vector<1x128x128xbf16>
    %122 = vector.shape_cast %121 : vector<1x128x128xbf16> to vector<128x128xbf16>
    %cst_59 = arith.constant dense<0.000000e+00> : vector<16x128xf32>
    %123 = tpu.matmul %120, %122, %cst_59 {dimension_numbers = #tpu.dot_dimension_numbers<[1], [0], [0], [1], [0, 0, 1, 1], [], []>} : vector<16x128xbf16>, vector<128x128xbf16>, vector<16x128xf32> -> vector<16x128xf32>
    %124 = arith.truncf %119 : vector<16x128xf32> to vector<16x128xbf16>
    %c5 = arith.constant 5 : index
    %c0_60 = arith.constant 0 : index
    %c0_61 = arith.constant 0 : index
    %125 = vector.load %arg3[%c5, %c0_60, %c0_61] : memref<9x128x128xbf16, #tpu.memory_space<vmem>>, vector<1x128x128xbf16>
    %126 = vector.shape_cast %125 : vector<1x128x128xbf16> to vector<128x128xbf16>
    %cst_62 = arith.constant dense<0.000000e+00> : vector<16x128xf32>
    %127 = tpu.matmul %124, %126, %cst_62 {dimension_numbers = #tpu.dot_dimension_numbers<[1], [0], [0], [1], [0, 0, 1, 1], [], []>} : vector<16x128xbf16>, vector<128x128xbf16>, vector<16x128xf32> -> vector<16x128xf32>
    %128 = arith.addf %123, %127 : vector<16x128xf32>
    %cst_63 = arith.constant 0.000000e+00 : f32
    %129 = vector.broadcast %cst_63 : f32 to vector<1x128xf32>
    %130 = vector.extract_strided_slice %119 {offsets = [0, 0], sizes = [15, 128], strides = [1, 1]} : vector<16x128xf32> to vector<15x128xf32>
    %131 = tpu.concatenate %129, %130 in 0 : vector<1x128xf32>, vector<15x128xf32> -> vector<16x128xf32>
    %132 = tpu.iota {dimensions = array<i32: 0>} : vector<16x1xi32>
    %c2_i32 = arith.constant 2 : i32
    %c0_i32_64 = arith.constant 0 : i32
    %133 = arith.cmpi eq, %c2_i32, %c0_i32_64 : i32
    %c1_i32_65 = arith.constant 1 : i32
    %134 = arith.select %133, %c1_i32_65, %c2_i32 : i32
    %135 = vector.broadcast %134 : i32 to vector<16x1xi32>
    %136 = arith.remsi %132, %135 : vector<16x1xi32>
    %c0_i32_66 = arith.constant 0 : i32
    %137 = vector.broadcast %c0_i32_66 : i32 to vector<16x1xi32>
    %138 = arith.cmpi ne, %136, %137 : vector<16x1xi32>
    %c0_i32_67 = arith.constant 0 : i32
    %139 = vector.broadcast %c0_i32_67 : i32 to vector<16x1xi32>
    %140 = arith.cmpi slt, %136, %139 : vector<16x1xi32>
    %c0_i32_68 = arith.constant 0 : i32
    %141 = arith.cmpi slt, %134, %c0_i32_68 : i32
    %142 = vector.broadcast %141 : i1 to vector<16x1xi1>
    %143 = vector.broadcast %142 : vector<16x1xi1> to vector<16x1xi1>
    %144 = arith.xori %140, %143 : vector<16x1xi1>
    %145 = arith.andi %144, %138 : vector<16x1xi1>
    %146 = vector.broadcast %134 : i32 to vector<16x1xi32>
    %147 = arith.addi %136, %146 : vector<16x1xi32>
    %148 = arith.select %145, %147, %136 : vector<16x1xi1>, vector<16x1xi32>
    %c0_i32_69 = arith.constant 0 : i32
    %149 = vector.broadcast %c0_i32_69 : i32 to vector<16x1xi32>
    %150 = arith.cmpi eq, %148, %149 : vector<16x1xi32>
    %cst_70 = arith.constant 0.000000e+00 : f32
    %151 = vector.shape_cast %150 : vector<16x1xi1> to vector<16x1xi1>
    %152 = vector.broadcast %151 : vector<16x1xi1> to vector<16x128xi1>
    %153 = vector.broadcast %cst_70 : f32 to vector<16x128xf32>
    %154 = arith.select %152, %153, %131 : vector<16x128xi1>, vector<16x128xf32>
    %155 = arith.truncf %154 : vector<16x128xf32> to vector<16x128xbf16>
    %c3 = arith.constant 3 : index
    %c0_71 = arith.constant 0 : index
    %c0_72 = arith.constant 0 : index
    %156 = vector.load %arg3[%c3, %c0_71, %c0_72] : memref<9x128x128xbf16, #tpu.memory_space<vmem>>, vector<1x128x128xbf16>
    %157 = vector.shape_cast %156 : vector<1x128x128xbf16> to vector<128x128xbf16>
    %cst_73 = arith.constant dense<0.000000e+00> : vector<16x128xf32>
    %158 = tpu.matmul %155, %157, %cst_73 {dimension_numbers = #tpu.dot_dimension_numbers<[1], [0], [0], [1], [0, 0, 1, 1], [], []>} : vector<16x128xbf16>, vector<128x128xbf16>, vector<16x128xf32> -> vector<16x128xf32>
    %159 = arith.addf %128, %158 : vector<16x128xf32>
    %160 = vector.extract_strided_slice %117 {offsets = [0, 0], sizes = [1, 128], strides = [1, 1]} : vector<3x128xf32> to vector<1x128xf32>
    %161 = vector.broadcast %160 : vector<1x128xf32> to vector<16x128xf32>
    %162 = arith.addf %159, %161 : vector<16x128xf32>
    %cst_74 = arith.constant 2.000000e-01 : f32
    %163 = vector.broadcast %cst_74 : f32 to vector<16x128xf32>
    %164 = arith.mulf %163, %162 : vector<16x128xf32>
    %165 = arith.maximumf %162, %164 : vector<16x128xf32>
    %166 = vector.extract_strided_slice %117 {offsets = [1, 0], sizes = [1, 128], strides = [1, 1]} : vector<3x128xf32> to vector<1x128xf32>
    %167 = vector.broadcast %166 : vector<1x128xf32> to vector<16x128xf32>
    %168 = arith.mulf %165, %167 : vector<16x128xf32>
    %169 = vector.extract_strided_slice %117 {offsets = [2, 0], sizes = [1, 128], strides = [1, 1]} : vector<3x128xf32> to vector<1x128xf32>
    %170 = vector.broadcast %169 : vector<1x128xf32> to vector<16x128xf32>
    %171 = arith.addf %168, %170 : vector<16x128xf32>
    %c0_75 = arith.constant 0 : index
    %c0_76 = arith.constant 0 : index
    %172 = vector.load %arg10[%c0_75, %c0_76] : memref<16x128xf32, #tpu.memory_space<vmem>>, vector<16x128xf32>
    tpu.vector_store %arg10[%c0_75, %c0_76], %171 {strides = array<i32>} : memref<16x128xf32, #tpu.memory_space<vmem>>, vector<16x128xf32>,
    %173 = vector.extract_strided_slice %0 {offsets = [3, 0, 0], sizes = [1, 3, 128], strides = [1, 1, 1]} : vector<4x3x128xf32> to vector<1x3x128xf32>
    %174 = vector.shape_cast %173 : vector<1x3x128xf32> to vector<3x128xf32>
    %c0_77 = arith.constant 0 : index
    %c0_78 = arith.constant 0 : index
    %175 = tpu.strided_load %arg10[%c0_77, %c0_78] {strides = array<i32: 2, 1>} : memref<16x128xf32, #tpu.memory_space<vmem>>, vector<8x128xf32>
    %c1_79 = arith.constant 1 : index
    %c0_80 = arith.constant 0 : index
    %176 = tpu.strided_load %arg10[%c1_79, %c0_80] {strides = array<i32: 2, 1>} : memref<16x128xf32, #tpu.memory_space<vmem>>, vector<8x128xf32>
    %177 = arith.truncf %175 : vector<8x128xf32> to vector<8x128xbf16>
    %c7 = arith.constant 7 : index
    %c0_81 = arith.constant 0 : index
    %c0_82 = arith.constant 0 : index
    %178 = vector.load %arg3[%c7, %c0_81, %c0_82] : memref<9x128x128xbf16, #tpu.memory_space<vmem>>, vector<1x128x128xbf16>
    %179 = vector.shape_cast %178 : vector<1x128x128xbf16> to vector<128x128xbf16>
    %cst_83 = arith.constant dense<0.000000e+00> : vector<8x128xf32>
    %180 = tpu.matmul %177, %179, %cst_83 {dimension_numbers = #tpu.dot_dimension_numbers<[1], [0], [0], [1], [0, 0, 1, 1], [], []>} : vector<8x128xbf16>, vector<128x128xbf16>, vector<8x128xf32> -> vector<8x128xf32>
    %181 = arith.truncf %176 : vector<8x128xf32> to vector<8x128xbf16>
    %c8 = arith.constant 8 : index
    %c0_84 = arith.constant 0 : index
    %c0_85 = arith.constant 0 : index
    %182 = vector.load %arg3[%c8, %c0_84, %c0_85] : memref<9x128x128xbf16, #tpu.memory_space<vmem>>, vector<1x128x128xbf16>
    %183 = vector.shape_cast %182 : vector<1x128x128xbf16> to vector<128x128xbf16>
    %cst_86 = arith.constant dense<0.000000e+00> : vector<8x128xf32>
    %184 = tpu.matmul %181, %183, %cst_86 {dimension_numbers = #tpu.dot_dimension_numbers<[1], [0], [0], [1], [0, 0, 1, 1], [], []>} : vector<8x128xbf16>, vector<128x128xbf16>, vector<8x128xf32> -> vector<8x128xf32>
    %185 = arith.addf %180, %184 : vector<8x128xf32>
    %186 = vector.extract_strided_slice %174 {offsets = [0, 0], sizes = [1, 128], strides = [1, 1]} : vector<3x128xf32> to vector<1x128xf32>
    %187 = vector.broadcast %186 : vector<1x128xf32> to vector<8x128xf32>
    %188 = arith.addf %185, %187 : vector<8x128xf32>
    %cst_87 = arith.constant 2.000000e-01 : f32
    %189 = vector.broadcast %cst_87 : f32 to vector<8x128xf32>
    %190 = arith.mulf %189, %188 : vector<8x128xf32>
    %191 = arith.maximumf %188, %190 : vector<8x128xf32>
    %192 = vector.extract_strided_slice %174 {offsets = [1, 0], sizes = [1, 128], strides = [1, 1]} : vector<3x128xf32> to vector<1x128xf32>
    %193 = vector.broadcast %192 : vector<1x128xf32> to vector<8x128xf32>
    %194 = arith.mulf %191, %193 : vector<8x128xf32>
    %195 = vector.extract_strided_slice %174 {offsets = [2, 0], sizes = [1, 128], strides = [1, 1]} : vector<3x128xf32> to vector<1x128xf32>
    %196 = vector.broadcast %195 : vector<1x128xf32> to vector<8x128xf32>
    %197 = arith.addf %194, %196 : vector<8x128xf32>
    %c0_88 = arith.constant 0 : index
    %c0_89 = arith.constant 0 : index
    %198 = vector.load %arg11[%c0_88, %c0_89] : memref<8x128xf32, #tpu.memory_space<vmem>>, vector<8x128xf32>
    tpu.vector_store %arg11[%c0_88, %c0_89], %197 {strides = array<i32>} : memref<8x128xf32, #tpu.memory_space<vmem>>, vector<8x128xf32>,
    %cst_90 = arith.constant 0.000000e+00 : f32
    %199 = vector.broadcast %cst_90 : f32 to vector<8x128xf32>
    %c0_91 = arith.constant 0 : index
    %c0_92 = arith.constant 0 : index
    %200 = vector.load %arg11[%c0_91, %c0_92] : memref<8x128xf32, #tpu.memory_space<vmem>>, vector<8x128xf32>
    %201 = vector.broadcast %1 : vector<1x128xf32> to vector<8x128xf32>
    %202 = arith.mulf %200, %201 : vector<8x128xf32>
    %203 = arith.addf %199, %202 : vector<8x128xf32>
    %cst_93 = arith.constant dense<0.000000e+00> : vector<8xf32>
    %204 = vector.multi_reduction <add>, %203, %cst_93 [1] : vector<8x128xf32> to vector<8xf32>
    %205 = vector.shape_cast %204 : vector<8xf32> to vector<8x1xf32>
    %c0_94 = arith.constant 0 : index
    %c0_95 = arith.constant 0 : index
    %206 = vector.load %arg6[%c0_94, %c0_95] : memref<1x1xf32, #tpu.memory_space<vmem>>, vector<1x1xf32>
    %207 = vector.broadcast %206 : vector<1x1xf32> to vector<8x1xf32>
    %208 = arith.addf %205, %207 : vector<8x1xf32>
    %cst_96 = arith.constant 5.000000e-01 : f32
    %209 = vector.broadcast %cst_96 : f32 to vector<8x1xf32>
    %210 = arith.mulf %209, %208 : vector<8x1xf32>
    %211 = math.tanh %210 : vector<8x1xf32>
    %cst_97 = arith.constant 1.000000e+00 : f32
    %212 = vector.broadcast %cst_97 : f32 to vector<8x1xf32>
    %213 = arith.addf %211, %212 : vector<8x1xf32>
    %cst_98 = arith.constant 5.000000e-01 : f32
    %214 = vector.broadcast %cst_98 : f32 to vector<8x1xf32>
    %215 = arith.mulf %214, %213 : vector<8x1xf32>
    %c0_99 = arith.constant 0 : index
    %c0_100 = arith.constant 0 : index
    %216 = vector.load %arg7[%c0_99, %c0_100] : memref<8x1xf32, #tpu.memory_space<vmem>>, vector<8x1xf32>
    tpu.vector_store %arg7[%c0_99, %c0_100], %215 {strides = array<i32>} : memref<8x1xf32, #tpu.memory_space<vmem>>, vector<8x1xf32>,
    return
  }
  func.func @transform_0(%arg0: i32) -> (i32, i32) {
    %c0_i32 = arith.constant 0 : i32
    %c0_i32_0 = arith.constant 0 : i32
    return %arg0, %c0_i32 : i32, i32
  }
  func.func @transform_1(%arg0: i32) -> (i32, i32, i32) {
    %c0_i32 = arith.constant 0 : i32
    %c0_i32_0 = arith.constant 0 : i32
    %c0_i32_1 = arith.constant 0 : i32
    %c0_i32_2 = arith.constant 0 : i32
    return %c0_i32, %c0_i32_0, %c0_i32_1 : i32, i32, i32
  }
  func.func @transform_2(%arg0: i32) -> (i32, i32, i32) {
    %c0_i32 = arith.constant 0 : i32
    %c0_i32_0 = arith.constant 0 : i32
    %c0_i32_1 = arith.constant 0 : i32
    %c0_i32_2 = arith.constant 0 : i32
    return %c0_i32, %c0_i32_0, %c0_i32_1 : i32, i32, i32
  }
  func.func @transform_3(%arg0: i32) -> (i32, i32, i32) {
    %c0_i32 = arith.constant 0 : i32
    %c0_i32_0 = arith.constant 0 : i32
    %c0_i32_1 = arith.constant 0 : i32
    %c0_i32_2 = arith.constant 0 : i32
    return %c0_i32, %c0_i32_0, %c0_i32_1 : i32, i32, i32
  }
  func.func @transform_4(%arg0: i32) -> (i32, i32) {
    %c0_i32 = arith.constant 0 : i32
    %c0_i32_0 = arith.constant 0 : i32
    %c0_i32_1 = arith.constant 0 : i32
    return %c0_i32, %c0_i32_0 : i32, i32
  }
  func.func @transform_5(%arg0: i32) -> (i32, i32) {
    %c0_i32 = arith.constant 0 : i32
    %c0_i32_0 = arith.constant 0 : i32
    %c0_i32_1 = arith.constant 0 : i32
    return %c0_i32, %c0_i32_0 : i32, i32
  }
  func.func @transform_6(%arg0: i32) -> (i32, i32) {
    %c0_i32 = arith.constant 0 : i32
    %c0_i32_0 = arith.constant 0 : i32
    return %arg0, %c0_i32 : i32, i32
  }
}

</mosaic_0001>

<bundles_post_ra>
// kernel: discriminator_forward.1
= control target key start
LH: loop header
LB: loop body
LE: loop exit
PB: predicated region body
PF: predicated region fallthrough
CT: control target
= control target key end

     0   :  { %v252_v0 = vlaneseq  ;;  %vm227_vm0 = vcmask 1040384   ;;  %vm112_vm3 = vcmask 523264   ;;  %s2408_s1 = inlined_call_operand.vmem [shape: bf16[3,64,128], index: 1, kind: input, shape index: {}]   ;;  %s2409_s0 = inlined_call_operand.vmem [shape: f32[128,64], index: 0, kind: input, shape index: {}]   ;;  %s2410_s2 = inlined_call_operand.vmem [shape: bf16[9,128,128], index: 2, kind: input, shape index: {}]   ;;  %s2411_s3 = inlined_call_operand.vmem [shape: f32[4,3,128], index: 3, kind: input, shape index: {}]   ;;  %s2412_s4 = inlined_call_operand.vmem [shape: f32[1,128], index: 4, kind: input, shape index: {}]   ;;  %s2413_s5 = inlined_call_operand.<no memory space> [shape: f32[1,1], index: 5, kind: input, shape index: {}]   ;;  %s2414_s6 = inlined_call_operand.vmem [shape: f32[8,1], index: 6, kind: output, shape index: {}]  }
   0x1   :  { %v1886_v1 = vld [vmem:[%s2408_s1 + $0x58] sm:$0xff]  ;;  %v1885_v5 = vld [vmem:[%s2408_s1 + $0x50] sm:$0xff]  ;;  %v1412_v9 = vld [vmem:[%s2409_s0 + $0x1] ss:$2 sm:$0xff] }
   0x2   :  { %v1882_v2 = vld [vmem:[%s2408_s1 + $0x38] sm:$0xff]  ;;  %v2009_v4 = vshrl.u32 %v252_v0, 7  ;;  %129 = vmatpush.bf16.msra.mxu0 %v1886_v1  ;;  %v1881_v6 = vld [vmem:[%s2408_s1 + $0x30] sm:$0xff]  ;;  %v228_v12 = vrot.slane %v1412_v9, 7  ;;  %v1884_v15 = vld [vmem:[%s2408_s1 + $0x48] sm:$0xff] }
   0x3   :  { %v1890_v3 = vld [vmem:[%s2408_s1 + $0x18] sm:$0xff]  ;;  %194 = vmatpush.bf16.msra.mxu1 %v1882_v2  ;;  %v1889_v7 = vld [vmem:[%s2408_s1 + $0x10] sm:$0xff]  ;;  %v1880_v16 = vld [vmem:[%s2408_s1 + $0x28] sm:$0xff] }
   0x4   :  { %441 = vmatpush.bf16.msra.mxu2 %v1890_v3  ;;  %v2021_v8 = vadd.s32 8, %v2009_v4  ;;  %v1413_v10 = vld [vmem:[%s2409_s0 + $0x11] ss:$2 sm:$0xff]  ;;  %v265_v11 = vand.u32 7, %v2009_v4  ;;  %v1888_v17 = vld [vmem:[%s2408_s1 + $0x8] sm:$0xff]  ;;  %v251_v19 = vsel %vm227_vm0, 0.0, %v228_v12 }
   0x5   :  { %v229_v13 = vrot.slane %v1413_v10, 7  ;;  %v1883_v22 = vld [vmem:[%s2408_s1 + $0x40] sm:$0xff]  ;;  %v1405_v25 = vld [vmem:[%s2409_s0 + $0x10] ss:$2 sm:$0xff]  ;;  %v75_v29 = vpack.c.bf16 %v1413_v10, %v1412_v9  ;;  %v2070_v32 = vadd.s32 16, %v2009_v4  ;;  %v2073_v33 = vadd.s32 24, %v2009_v4 }
   0x6   :  { %v272_v14 = vand.u32 7, %v2021_v8  ;;  %130 = vmatpush.bf16.msra.mxu0 %v1885_v5  ;;  %vm2042_vm1 = vcmp.eq.s32.totalorder %v265_v11, 0  ;;  %v1879_v23 = vld [vmem:[%s2408_s1 + $0x20] sm:$0xff]  ;;  %v1415_v35 = vld [vmem:[%s2409_s0 + $0x31] ss:$2 sm:$0xff]  ;;  %v257_v49 = vadd.s32 32, %v2009_v4 }
   0x7   :  { %195 = vmatpush.bf16.msra.mxu1 %v1881_v6  ;;  %v230_v18 = vsel %vm227_vm0, %v228_v12, %v229_v13  ;;  %v31_v24 = vld [vmem:[%s2409_s0] ss:$2 sm:$0xff]  ;;  %v381_v27 = vsel %vm2042_vm1, 0.0, %v251_v19  ;;  %v1414_v34 = vld [vmem:[%s2409_s0 + $0x21] ss:$2 sm:$0xff]  ;;  %v233_v37 = vrot.slane %v1415_v35, 7 }
   0x8   :  { %442 = vmatpush.bf16.msra.mxu2 %v1889_v7  ;;  %vm2046_vm2 = vcmp.eq.s32.totalorder %v272_v14, 0  ;;  %v1887_v26 = vld [vmem:[%s2408_s1] sm:$0xff]  ;;  %v62_v30 = vpack.c.bf16 %v1405_v25, %v31_v24  ;;  %v231_v36 = vrot.slane %v1414_v34, 7  ;;  %v279_v38 = vand.u32 7, %v2070_v32  ;;  %v1407_v43 = vld [vmem:[%s2409_s0 + $0x30] ss:$2 sm:$0xff] }
   0x9   :  { %v382_v28 = vsel %vm2046_vm2, 0.0, %v230_v18  ;;  %v286_v39 = vand.u32 7, %v2073_v33  ;;  %v1406_v42 = vld [vmem:[%s2409_s0 + $0x20] ss:$2 sm:$0xff]  ;;  %v76_v46 = vpack.c.bf16 %v1415_v35, %v1414_v34  ;;  %v258_v50 = vadd.s32 40, %v2009_v4  ;;  %v1906_v21 = vld [vmem:[%s2410_s2 + $0xb8] sm:$0xff] }
   0xa   :  { %131 = vmatpush.bf16.msra.mxu0 %v1884_v15  ;;  %v389_v31 = vpack.c.bf16 %v382_v28, %v381_v27  ;;  %v232_v40 = vsel %vm227_vm0, %v229_v13, %v231_v36  ;;  %v234_v41 = vsel %vm227_vm0, %v231_v36, %v233_v37  ;;  %vm359_vm4 = vcmp.eq.s32.totalorder %v279_v38, 0  ;;  %v1416_v51 = vld [vmem:[%s2409_s0 + $0x41] ss:$2 sm:$0xff]  ;;  %v1417_v52 = vld [vmem:[%s2409_s0 + $0x51] ss:$2 sm:$0xff]  ;;  %626 = vmatpush.bf16.msra.mxu3 %v1906_v21 }
   0xb   :  { %196 = vmatpush.bf16.msra.mxu1 %v1880_v16  ;;  %vm360_vm5 = vcmp.eq.s32.totalorder %v286_v39, 0  ;;  %v383_v44 = vsel %vm359_vm4, 0.0, %v232_v40  ;;  %v63_v47 = vpack.c.bf16 %v1407_v43, %v1406_v42  ;;  %v235_v53 = vrot.slane %v1416_v51, 7  ;;  %v1408_v59 = vld [vmem:[%s2409_s0 + $0x40] ss:$2 sm:$0xff]  ;;  %v1913_v24 = vld [vmem:[%s2410_s2 + $0x30] sm:$0xff] }
   0xc   :  { %443 = vmatpush.bf16.msra.mxu2 %v1888_v17  ;;  %v384_v45 = vsel %vm360_vm5, 0.0, %v234_v41  ;;  %v237_v54 = vrot.slane %v1417_v52, 7  ;;  %v293_v55 = vand.u32 7, %v257_v49  ;;  %v300_v56 = vand.u32 7, %v258_v50  ;;  %v1409_v60 = vld [vmem:[%s2409_s0 + $0x50] ss:$2 sm:$0xff] }
   0xd   :  { %v390_v48 = vpack.c.bf16 %v384_v45, %v383_v44  ;;  %v236_v57 = vsel %vm227_vm0, %v233_v37, %v235_v53  ;;  %v77_v63 = vpack.c.bf16 %v1417_v52, %v1416_v51  ;;  %v64_v0 = vpack.c.bf16 %v1409_v60, %v1408_v59  ;;  %v1418_v5 = vld [vmem:[%s2409_s0 + $0x61] ss:$2 sm:$0xff]  ;;  %v1419_v6 = vld [vmem:[%s2409_s0 + $0x71] ss:$2 sm:$0xff]  ;;  %v1410_v14 = vld [vmem:[%s2409_s0 + $0x60] ss:$2 sm:$0xff] }
   0xe   :  { %132 = vmatpush.bf16.msra.mxu0 %v1883_v22  ;;  %v238_v58 = vsel %vm227_vm0, %v235_v53, %v237_v54  ;;  %vm361_vm6 = vcmp.eq.s32.totalorder %v293_v55, 0  ;;  %vm362_vm7 = vcmp.eq.s32.totalorder %v300_v56, 0  ;;  %v259_v2 = vadd.s32 48, %v2009_v4  ;;  %v1411_v15 = vld [vmem:[%s2409_s0 + $0x70] ss:$2 sm:$0xff]  ;;  %v1904_v25 = vld [vmem:[%s2410_s2 + $0xa8] sm:$0xff] }
   0xf   :  { %197 = vmatpush.bf16.msra.mxu1 %v1879_v23  ;;  %v385_v61 = vsel %vm361_vm6, 0.0, %v236_v57  ;;  %v386_v62 = vsel %vm362_vm7, 0.0, %v238_v58  ;;  %v260_v3 = vadd.s32 56, %v2009_v4  ;;  %v239_v7 = vrot.slane %v1418_v5, 7  ;;  %v1914_v22 = vld [vmem:[%s2410_s2 + $0x38] sm:$0xff]  ;;  %v1905_v23 = vld [vmem:[%s2410_s2 + $0xb0] sm:$0xff] }
  0x10   :  { %444 = vmatpush.bf16.msra.mxu2 %v1887_v26  ;;  %v391_v1 = vpack.c.bf16 %v386_v62, %v385_v61  ;;  %v241_v9 = vrot.slane %v1419_v6, 7  ;;  %v307_v10 = vand.u32 7, %v259_v2  ;;  %v78_v18 = vpack.c.bf16 %v1419_v6, %v1418_v5  ;;  %627 = vmatpush.bf16.msra.mxu3 %v1905_v23  ;;  %v1912_v28 = vld [vmem:[%s2410_s2 + $0x28] sm:$0xff]  ;;  %v1911_v34 = vld [vmem:[%s2410_s2 + $0x20] sm:$0xff]  ;;  %v1902_v35 = vld [vmem:[%s2410_s2 + $0x98] sm:$0xff] }
  0x11   :  { %1452 = vmatmul.msk.bf16.vlgmr.msra.gmra.mxu0 %vm112_vm3, %v75_v29  ;;  %v314_v11 = vand.u32 7, %v260_v3  ;;  %v240_v12 = vsel %vm227_vm0, %v237_v54, %v239_v7  ;;  %v65_v19 = vpack.c.bf16 %v1411_v15, %v1410_v14  ;;  %v1903_v29 = vld [vmem:[%s2410_s2 + $0xa0] sm:$0xff]  ;;  %v1910_v41 = vld [vmem:[%s2410_s2 + $0x18] sm:$0xff]  ;;  %v1901_v42 = vld [vmem:[%s2410_s2 + $0x90] sm:$0xff] }
  0x12   :  { %1472 = vmatmul.msk.bf16.vlgmr.msra.gmra.mxu1 %vm112_vm3, %v62_v30  ;;  %v242_v13 = vsel %vm227_vm0, %v239_v7, %v241_v9  ;;  %vm363_vm8 = vcmp.eq.s32.totalorder %v307_v10, 0  ;;  %858 = vmatpush.bf16.msrb.mxu0 %v1914_v22  ;;  %v26_v30 = vld [vmem:[%s2411_s3] sm:$0x7]  ;;  %v1908_v56 = vld [vmem:[%s2410_s2 + $0x8] sm:$0xff]  ;;  %v1898_v21 = vld [vmem:[%s2410_s2 + $0x78] sm:$0xff] }
  0x13   :  { %1492 = vmatmul.msk.bf16.vlgmr.msra.gmra.mxu2 %vm112_vm3, %v389_v31  ;;  %vm364_vm9 = vcmp.eq.s32.totalorder %v314_v11, 0  ;;  %v387_v16 = vsel %vm363_vm8, 0.0, %v240_v12  ;;  %v2165_v36 = vperm.slane %v26_v30, 0  ;;  %v2174_v45 = vperm.slane %v26_v30, 1  ;;  %v1899_v57 = vld [vmem:[%s2410_s2 + $0x80] sm:$0xff] }
  0x14   :  { %v388_v17 = vsel %vm364_vm9, 0.0, %v242_v13  ;;  %628 = vmatpush.bf16.msra.mxu3 %v1904_v25  ;;  %v2182_v49 = vperm.slane %v26_v30, 2  ;;  %v1907_v62 = vld [vmem:[%s2410_s2] sm:$0xff] }
  0x15   :  { %v392_v20 = vpack.c.bf16 %v388_v17, %v387_v16 }
  0x16   :  { %859 = vmatpush.bf16.msrb.mxu0 %v1913_v24 }
  0x18   :  { %629 = vmatpush.bf16.msra.mxu3 %v1903_v29 }
  0x1a   :  { %860 = vmatpush.bf16.msrb.mxu0 %v1912_v28  ;;  %v1897_v28 = vld [vmem:[%s2410_s2 + $0x70] sm:$0xff] }
  0x1c   :  { %630 = vmatpush.bf16.msra.mxu3 %v1902_v35 }
  0x1e   :  { %861 = vmatpush.bf16.msrb.mxu0 %v1911_v34  ;;  %v1896_v34 = vld [vmem:[%s2410_s2 + $0x68] sm:$0xff] }
  0x20   :  { %631 = vmatpush.bf16.msra.mxu3 %v1901_v42  ;;  %v1895_v42 = vld [vmem:[%s2410_s2 + $0x60] sm:$0xff] }
  0x21   :  { %1453 = vmatmul.msk.bf16.gmra.mxu0 %vm112_vm3, %v76_v46  ;;  %v1909_v46 = vld [vmem:[%s2410_s2 + $0x10] sm:$0xff] }
  0x22   :  { %1473 = vmatmul.msk.bf16.gmra.mxu1 %vm112_vm3, %v63_v47  ;;  %862 = vmatpush.bf16.msrb.mxu0 %v1910_v41  ;;  %v1900_v47 = vld [vmem:[%s2410_s2 + $0x88] sm:$0xff]  ;;  %v739_v41 = vand.u32 3, %v2021_v8 }
  0x23   :  { %1493 = vmatmul.msk.bf16.gmra.mxu2 %vm112_vm3, %v390_v48 }
  0x24   :  { %632 = vmatpush.bf16.msra.mxu3 %v1900_v47  ;;  %vm2222_vm10 = vcmp.ne.s32.totalorder %v739_v41, 0 }
  0x26   :  { %863 = vmatpush.bf16.msrb.mxu0 %v1909_v46 }
  0x28   :  { %633 = vmatpush.bf16.msra.mxu3 %v1899_v57 }
  0x2a   :  { %864 = vmatpush.bf16.msrb.mxu0 %v1908_v56 }
  0x2c   :  { %693 = vmatpush.bf16.msrb.mxu3 %v1898_v21 }
  0x2e   :  { %865 = vmatpush.bf16.msrb.mxu0 %v1907_v62 }
  0x30   :  { %694 = vmatpush.bf16.msrb.mxu3 %v1897_v28 }
  0x31   :  { %1454 = vmatmul.msk.bf16.gmra.mxu0 %vm112_vm3, %v77_v63 }
  0x32   :  { %1474 = vmatmul.msk.bf16.gmra.mxu1 %vm112_vm3, %v64_v0 }
  0x33   :  { %1494 = vmatmul.msk.bf16.gmra.mxu2 %vm112_vm3, %v391_v1 }
  0x34   :  { %695 = vmatpush.bf16.msrb.mxu3 %v1896_v34 }
  0x38   :  { %696 = vmatpush.bf16.msrb.mxu3 %v1895_v42 }
  0x41   :  { %1455 = vmatmul.msk.bf16.gmra.mxu0 %vm112_vm3, %v78_v18 }
  0x42   :  { %1475 = vmatmul.msk.bf16.gmra.mxu1 %vm112_vm3, %v65_v19 }
  0x43   :  { %1495 = vmatmul.msk.bf16.gmra.mxu2 %vm112_vm3, %v392_v20 }
  0x8e   :  { %v134_v26 = vpop.f32.mrf.mxu0 }
  0x8f   :  { %v199_v27 = vpop.f32.mrf.mxu1 }
  0x90   :  { %v200_v31 = vadd.f32 %v199_v27, %v134_v26 }
  0x96   :  { %v446_v37 = vpop.f32.mrf.mxu2  ;;  %v136_v39 = vpop.f32.mrf.mxu0 }
  0x97   :  { %v466_v38 = vadd.f32 %v446_v37, %v200_v31  ;;  %v201_v40 = vpop.f32.mrf.mxu1 }
  0x98   :  { %v202_v50 = vadd.f32 %v201_v40, %v136_v39  ;;  %v732_v40 = vand.u32 3, %v2009_v4 }
  0x99   :  { %v475_v43 = vadd.f32 %v2165_v36, %v466_v38 }
  0x9a   :  { %vm2226_vm11 = vcmp.ne.s32.totalorder %v732_v40, 0  ;;  %v1921_v40 = vld [vmem:[%s2410_s2 + $0x130] sm:$0xff] }
  0x9b   :  { %v483_v44 = vmul.f32 0.2, %v475_v43  ;;  %vm1626_vm12 = vmpackc.low %vm2222_vm10, %vm2226_vm11 }
  0x9d   :  { %v491_v48 = vmax.f32 %v475_v43, %v483_v44 }
  0x9e   :  { %v448_v51 = vpop.f32.mrf.mxu2  ;;  %v139_v54 = vpop.f32.mrf.mxu0 }
  0x9f   :  { %v500_v52 = vmul.f32 %v2174_v45, %v491_v48  ;;  %v467_v53 = vadd.f32 %v448_v51, %v202_v50  ;;  %v204_v55 = vpop.f32.mrf.mxu1 }
  0xa0   :  { %v205_v61 = vadd.f32 %v204_v55, %v139_v54  ;;  %v1927_v54 = vld [vmem:[%s2410_s2 + $0x160] sm:$0xff] }
  0xa1   :  { %v509_v58 = vadd.f32 %v2182_v49, %v500_v52  ;;  %v476_v59 = vadd.f32 %v2165_v36, %v467_v53  ;;  %v1936_v53 = vld [vmem:[%s2410_s2 + $0xe8] sm:$0xff] }
  0xa3   :  { %517 = vst [vmem:[#allocation2] sm:$0xff] %v509_v58  ;;  %v484_v60 = vmul.f32 0.2, %v476_v59 }
  0xa5   :  { %v492_v63 = vmax.f32 %v476_v59, %v484_v60  ;;  %v1894_v59 = vld [vmem:[%s2410_s2 + $0x58] sm:$0xff] }
  0xa6   :  { %v451_v0 = vpop.f32.mrf.mxu2  ;;  %v141_v3 = vpop.f32.mrf.mxu0  ;;  %697 = vmatpush.bf16.msrb.mxu3 %v1894_v59 }
  0xa7   :  { %v501_v1 = vmul.f32 %v2174_v45, %v492_v63  ;;  %v468_v2 = vadd.f32 %v451_v0, %v205_v61  ;;  %v206_v5 = vpop.f32.mrf.mxu1 }
  0xa8   :  { %v207_v11 = vadd.f32 %v206_v5, %v141_v3  ;;  %v1893_v3 = vld [vmem:[%s2410_s2 + $0x50] sm:$0xff] }
  0xa9   :  { %v510_v6 = vadd.f32 %v2182_v49, %v501_v1  ;;  %v477_v7 = vadd.f32 %v2165_v36, %v468_v2 }
  0xaa   :  { %698 = vmatpush.bf16.msrb.mxu3 %v1893_v3 }
  0xab   :  { %518 = vst [vmem:[#allocation2 + $0x8] sm:$0xff] %v510_v6  ;;  %v485_v9 = vmul.f32 0.2, %v477_v7 }
  0xad   :  { %v493_v10 = vmax.f32 %v477_v7, %v485_v9 }
  0xae   :  { %v453_v12 = vpop.f32.mrf.mxu2  ;;  %v144_v15 = vpop.f32.mrf.mxu0 }
  0xaf   :  { %v502_v13 = vmul.f32 %v2174_v45, %v493_v10  ;;  %v469_v14 = vadd.f32 %v453_v12, %v207_v11  ;;  %v209_v16 = vpop.f32.mrf.mxu1  ;;  %v1892_v10 = vld [vmem:[%s2410_s2 + $0x48] sm:$0xff] }
  0xb0   :  { %v210_v20 = vadd.f32 %v209_v16, %v144_v15  ;;  %699 = vmatpush.bf16.msrb.mxu3 %v1892_v10  ;;  %v1891_v15 = vld [vmem:[%s2410_s2 + $0x40] sm:$0xff]  ;;  %v1933_v10 = vld [vmem:[%s2410_s2 + $0xd0] sm:$0xff] }
  0xb1   :  { %v511_v17 = vadd.f32 %v2182_v49, %v502_v13  ;;  %v478_v18 = vadd.f32 %v2165_v36, %v469_v14 }
  0xb2   :  { %v533_v39 = vld [vmem:[#allocation2 + $0x1] ss:$2 sm:$0xff]  ;;  %v525_v34 = vld [vmem:[#allocation2] ss:$2 sm:$0xff] }
  0xb3   :  { %519 = vst [vmem:[#allocation2 + $0x10] sm:$0xff] %v511_v17  ;;  %v486_v19 = vmul.f32 0.2, %v478_v18  ;;  %v716_v51 = vrot.slane %v533_v39, 7 }
  0xb4   :  { %700 = vmatpush.bf16.msrb.mxu3 %v1891_v15 }
  0xb5   :  { %v494_v22 = vmax.f32 %v478_v18, %v486_v19  ;;  %v727_v62 = vsel %vm227_vm0, 0.0, %v716_v51 }
  0xb6   :  { %v456_v23 = vpop.f32.mrf.mxu2  ;;  %v146_v26 = vpop.f32.mrf.mxu0 }
  0xb7   :  { %v503_v24 = vmul.f32 %v2174_v45, %v494_v22  ;;  %v470_v25 = vadd.f32 %v456_v23, %v210_v20  ;;  %v211_v27 = vpop.f32.mrf.mxu1 }
  0xb8   :  { %v212_v37 = vadd.f32 %v211_v27, %v146_v26  ;;  %v753_v26 = vand.u32 3, %v2073_v33 }
  0xb9   :  { %v512_v29 = vadd.f32 %v2182_v49, %v503_v24  ;;  %v479_v30 = vadd.f32 %v2165_v36, %v470_v25  ;;  %v746_v25 = vand.u32 3, %v2070_v32 }
  0xba   :  { %vm1957_vm13 = vcmp.ne.s32.totalorder %v753_v26, 0 }
  0xbb   :  { %520 = vst [vmem:[#allocation2 + $0x18] sm:$0xff] %v512_v29  ;;  %v487_v31 = vmul.f32 0.2, %v479_v30  ;;  %vm1958_vm14 = vcmp.ne.s32.totalorder %v746_v25, 0 }
  0xbc   :  { %vm1631_vm15 = vmpackc.low %vm1957_vm13, %vm1958_vm14 }
  0xbd   :  { %v495_v35 = vmax.f32 %v479_v30, %v487_v31 }
  0xbe   :  { %v458_v38 = vpop.f32.mrf.mxu2  ;;  %v149_v46 = vpop.f32.mrf.mxu0 }
  0xbf   :  { %v504_v43 = vmul.f32 %v2174_v45, %v495_v35  ;;  %v471_v44 = vadd.f32 %v458_v38, %v212_v37  ;;  %v214_v47 = vpop.f32.mrf.mxu1  ;;  %v1922_v38 = vld [vmem:[%s2410_s2 + $0x138] sm:$0xff] }
  0xc0   :  { %v215_v56 = vadd.f32 %v214_v47, %v149_v46  ;;  %1061 = vmatpush.bf16.msrb.mxu2 %v1922_v38  ;;  %v1938_v47 = vld [vmem:[%s2410_s2 + $0xf8] sm:$0xff] }
  0xc1   :  { %v513_v48 = vadd.f32 %v2182_v49, %v504_v43  ;;  %v480_v50 = vadd.f32 %v2165_v36, %v471_v44  ;;  %v1929_v43 = vld [vmem:[%s2410_s2 + $0x170] sm:$0xff]  ;;  %v1920_v44 = vld [vmem:[%s2410_s2 + $0x128] sm:$0xff] }
  0xc2   :  { %v535_v52 = vld [vmem:[#allocation2 + $0x11] ss:$2 sm:$0xff] }
  0xc3   :  { %521 = vst [vmem:[#allocation2 + $0x20] sm:$0xff] %v513_v48  ;;  %v488_v55 = vmul.f32 0.2, %v480_v50  ;;  %v559_v57 = vpack.c.bf16 %v535_v52, %v533_v39  ;;  %v717_v58 = vrot.slane %v535_v52, 7  ;;  %v1930_v39 = vld [vmem:[%s2410_s2 + $0x178] sm:$0xff]  ;;  %v1928_v48 = vld [vmem:[%s2410_s2 + $0x168] sm:$0xff] }
  0xc4   :  { %999 = vmatpush.bf16.msrb.mxu1 %v1930_v39  ;;  %1062 = vmatpush.bf16.msrb.mxu2 %v1921_v40 }
  0xc5   :  { %v496_v60 = vmax.f32 %v480_v50, %v488_v55  ;;  %634 = vmatmul.bf16.vlgmr.msra.gmra.mxu3 %v559_v57  ;;  %v718_v61 = vsel %vm227_vm0, %v716_v51, %v717_v58  ;;  %v1919_v50 = vld [vmem:[%s2410_s2 + $0x120] sm:$0xff]  ;;  %v1937_v51 = vld [vmem:[%s2410_s2 + $0xf0] sm:$0xff]  ;;  %v1918_v57 = vld [vmem:[%s2410_s2 + $0x118] sm:$0xff] }
  0xc6   :  { %v1627_v63 = vpack.c.bf16 %v718_v61, %v727_v62  ;;  %v461_v0 = vpop.f32.mrf.mxu2  ;;  %v151_v7 = vpop.f32.mrf.mxu0  ;;  %1181 = vmatpush.bf16.msra.mxu3 %v1938_v47 }
  0xc7   :  { %v505_v1 = vmul.f32 %v2174_v45, %v496_v60  ;;  %v472_v2 = vadd.f32 %v461_v0, %v215_v56  ;;  %v216_v9 = vpop.f32.mrf.mxu1  ;;  %v27_v56 = vld [vmem:[%s2411_s3 + $0x4] sm:$0x7]  ;;  %v1926_v60 = vld [vmem:[%s2410_s2 + $0x158] sm:$0xff] }
  0xc8   :  { %1628 = vmatmul.msk.bf16.vlgmr.msrb.gmra.mxu0 %vm1626_vm12, %v1627_v63  ;;  %v217_v13 = vadd.f32 %v216_v9, %v151_v7  ;;  %1000 = vmatpush.bf16.msrb.mxu1 %v1929_v43  ;;  %v881_v62 = vperm.slane %v27_v56, 0  ;;  %v1934_v0 = vld [vmem:[%s2410_s2 + $0xd8] sm:$0xff]  ;;  %v1916_v7 = vld [vmem:[%s2410_s2 + $0x108] sm:$0xff] }
  0xc9   :  { %v514_v5 = vadd.f32 %v2182_v49, %v505_v1  ;;  %v481_v6 = vadd.f32 %v2165_v36, %v472_v2  ;;  %1063 = vmatpush.bf16.msrb.mxu2 %v1920_v44  ;;  %v1917_v1 = vld [vmem:[%s2410_s2 + $0x110] sm:$0xff]  ;;  %v1924_v9 = vld [vmem:[%s2410_s2 + $0x148] sm:$0xff]  ;;  %v1087_v44 = vand.u32 1, %v2009_v4 }
  0xca   :  { %1182 = vmatpush.bf16.msra.mxu3 %v1937_v51  ;;  %v1925_v2 = vld [vmem:[%s2410_s2 + $0x150] sm:$0xff] }
  0xcb   :  { %522 = vst [vmem:[#allocation2 + $0x28] sm:$0xff] %v514_v5  ;;  %v489_v11 = vmul.f32 0.2, %v481_v6  ;;  %vm1960_vm2 = vcmp.ne.s32.totalorder %v1087_v44, 0 }
  0xcc   :  { %1001 = vmatpush.bf16.msrb.mxu1 %v1928_v48 }
  0xcd   :  { %v497_v12 = vmax.f32 %v481_v6, %v489_v11  ;;  %1064 = vmatpush.bf16.msrb.mxu2 %v1919_v50  ;;  %v894_v6 = vperm.slane %v27_v56, 1 }
  0xce   :  { %v463_v14 = vpop.f32.mrf.mxu2  ;;  %1183 = vmatpush.bf16.msra.mxu3 %v1936_v53 }
  0xcf   :  { %v506_v16 = vmul.f32 %v2174_v45, %v497_v12  ;;  %v473_v17 = vadd.f32 %v463_v14, %v217_v13  ;;  %v899_v14 = vperm.slane %v27_v56, 2 }
  0xd0   :  { %1002 = vmatpush.bf16.msrb.mxu1 %v1927_v54 }
  0xd1   :  { %v515_v18 = vadd.f32 %v2182_v49, %v506_v16  ;;  %v482_v19 = vadd.f32 %v2165_v36, %v473_v17  ;;  %1065 = vmatpush.bf16.msrb.mxu2 %v1918_v57  ;;  %v1915_v16 = vld [vmem:[%s2410_s2 + $0x100] sm:$0xff] }
  0xd2   :  { %v537_v24 = vld [vmem:[#allocation2 + $0x21] ss:$2 sm:$0xff]  ;;  %v529_v33 = vld [vmem:[#allocation2 + $0x20] ss:$2 sm:$0xff] }
  0xd3   :  { %523 = vst [vmem:[#allocation2 + $0x30] sm:$0xff] %v515_v18  ;;  %v490_v20 = vmul.f32 0.2, %v482_v19  ;;  %v719_v27 = vrot.slane %v537_v24, 7  ;;  %v1923_v17 = vld [vmem:[%s2410_s2 + $0x140] sm:$0xff] }
  0xd4   :  { %1003 = vmatpush.bf16.msrb.mxu1 %v1926_v60  ;;  %v1945_v60 = vld [vmem:[%s2410_s2 + $0x1f0] sm:$0xff] }
  0xd5   :  { %v498_v21 = vmax.f32 %v482_v19, %v490_v20  ;;  %v720_v30 = vsel %vm227_vm0, %v717_v58, %v719_v27  ;;  %v1935_v58 = vld [vmem:[%s2410_s2 + $0xe0] sm:$0xff]  ;;  %1066 = vmatpush.bf16.msrb.mxu2 %v1917_v1  ;;  %v1932_v20 = vld [vmem:[%s2410_s2 + $0xc8] sm:$0xff]  ;;  %v1950_v1 = vld [vmem:[%s2410_s2 + $0x218] sm:$0xff] }
  0xd6   :  { %1184 = vmatpush.bf16.msra.mxu3 %v1935_v58  ;;  %v1946_v58 = vld [vmem:[%s2410_s2 + $0x1f8] sm:$0xff] }
  0xd7   :  { %v507_v22 = vmul.f32 %v2174_v45, %v498_v21 }
  0xd8   :  { %1004 = vmatpush.bf16.msrb.mxu1 %v1925_v2  ;;  %v1942_v2 = vld [vmem:[%s2410_s2 + $0x1d8] sm:$0xff] }
  0xd9   :  { %v516_v23 = vadd.f32 %v2182_v49, %v507_v22  ;;  %v527_v49 = vld [vmem:[#allocation2 + $0x10] ss:$2 sm:$0xff]  ;;  %1067 = vmatpush.bf16.msrb.mxu2 %v1916_v7  ;;  %v1940_v7 = vld [vmem:[%s2410_s2 + $0x1c8] sm:$0xff] }
  0xda   :  { %v540_v35 = vpack.c.bf16 %v527_v49, %v525_v34  ;;  %1185 = vmatpush.bf16.msra.mxu3 %v1934_v0  ;;  %v1943_v0 = vld [vmem:[%s2410_s2 + $0x1e0] sm:$0xff] }
  0xdb   :  { %524 = vst [vmem:[#allocation2 + $0x38] sm:$0xff] %v516_v23 }
  0xdc   :  { %1005 = vmatpush.bf16.msrb.mxu1 %v1924_v9  ;;  %v1947_v9 = vld [vmem:[%s2410_s2 + $0x200] sm:$0xff] }
  0xdd   :  { %1068 = vmatpush.bf16.msrb.mxu2 %v1915_v16 }
  0xde   :  { %1186 = vmatpush.bf16.msra.mxu3 %v1933_v10  ;;  %v1939_v10 = vld [vmem:[%s2410_s2 + $0x1c0] sm:$0xff] }
  0xe0   :  { %1006 = vmatpush.bf16.msrb.mxu1 %v1923_v17 }
  0xe2   :  { %v539_v28 = vld [vmem:[#allocation2 + $0x31] ss:$2 sm:$0xff]  ;;  %v531_v32 = vld [vmem:[#allocation2 + $0x30] ss:$2 sm:$0xff]  ;;  %1187 = vmatpush.bf16.msra.mxu3 %v1932_v20 }
  0xe3   :  { %v560_v29 = vpack.c.bf16 %v539_v28, %v537_v24  ;;  %v721_v36 = vrot.slane %v539_v28, 7  ;;  %v541_v37 = vpack.c.bf16 %v531_v32, %v529_v33  ;;  %v1931_v24 = vld [vmem:[%s2410_s2 + $0xc0] sm:$0xff] }
  0xe4   :  { %1360 = vmatpush.bf16.msra.mxu1 %v1946_v58 }
  0xe5   :  { %639 = vmatmul.bf16.gmra.mxu3 %v560_v29  ;;  %v722_v31 = vsel %vm227_vm0, %v719_v27, %v721_v36 }
  0xe6   :  { %v1632_v45 = vpack.c.bf16 %v722_v31, %v720_v30  ;;  %1188 = vmatpush.bf16.msra.mxu3 %v1931_v24 }
  0xe8   :  { %1633 = vmatmul.msk.bf16.gmra.mxu0 %vm1631_vm15, %v1632_v45  ;;  %1361 = vmatpush.bf16.msra.mxu1 %v1945_v60 }
  0xf5   :  { %701 = vmatmul.bf16.vlgmr.msrb.gmra.mxu3 %v540_v35 }
 0x105   :  { %706 = vmatmul.bf16.gmra.mxu3 %v541_v37 }
 0x145   :  { %v867_v55 = vpop.f32.mrf.mxu0 }
 0x148   :  { %v635_v41 = vpop.f32.mrf.mxu3 }
 0x14d   :  { %v869_v11 = vpop.f32.mrf.mxu0 }
 0x150   :  { %v637_v42 = vpop.f32.mrf.mxu3 }
 0x165   :  { %v872_v25 = vpop.f32.mrf.mxu0 }
 0x168   :  { %v2275_v46 = vpop.f32.mrf.mxu3 }
 0x16d   :  { %v874_v32 = vpop.f32.mrf.mxu0 }
 0x170   :  { %v2289_v52 = vpop.f32.mrf.mxu3 }
 0x178   :  { %v702_v59 = vpop.f32.mrf.mxu3 }
 0x179   :  { %v703_v61 = vadd.f32 %v702_v59, %v635_v41  ;;  %v1953_v59 = vld [vmem:[%s2410_s2 + $0x230] sm:$0xff] }
 0x17b   :  { %v877_v63 = vadd.f32 %v867_v55, %v703_v61  ;;  %v1952_v61 = vld [vmem:[%s2410_s2 + $0x228] sm:$0xff] }
 0x17d   :  { %v882_v3 = vadd.f32 %v881_v62, %v877_v63  ;;  %v1951_v63 = vld [vmem:[%s2410_s2 + $0x220] sm:$0xff] }
 0x17f   :  { %v886_v5 = vmul.f32 0.2, %v882_v3 }
 0x180   :  { %v704_v12 = vpop.f32.mrf.mxu3 }
 0x181   :  { %v890_v13 = vmax.f32 %v882_v3, %v886_v5  ;;  %v705_v15 = vadd.f32 %v704_v12, %v637_v42  ;;  %v1949_v3 = vld [vmem:[%s2410_s2 + $0x210] sm:$0xff]  ;;  %v28_v12 = vld [vmem:[%s2411_s3 + $0x8] sm:$0x7] }
 0x182   :  { %v1941_v5 = vld [vmem:[%s2410_s2 + $0x1d0] sm:$0xff] }
 0x183   :  { %v895_v18 = vmul.f32 %v894_v6, %v890_v13  ;;  %v878_v19 = vadd.f32 %v869_v11, %v705_v15  ;;  %v1197_v15 = vperm.slane %v28_v12, 0 }
 0x185   :  { %v900_v21 = vadd.f32 %v899_v14, %v895_v18  ;;  %v883_v22 = vadd.f32 %v881_v62, %v878_v19 }
 0x187   :  { %904 = vst [vmem:[#allocation3] sm:$0xff] %v900_v21  ;;  %v887_v23 = vmul.f32 0.2, %v883_v22  ;;  %v1204_v21 = vperm.slane %v28_v12, 1 }
 0x188   :  { %v707_v26 = vpop.f32.mrf.mxu3 }
 0x189   :  { %v891_v27 = vmax.f32 %v883_v22, %v887_v23  ;;  %v708_v28 = vadd.f32 %v707_v26, %v2275_v46  ;;  %v1094_v46 = vand.u32 1, %v2021_v8  ;;  %v1954_v8 = vld [vmem:[%s2410_s2 + $0x238] sm:$0xff] }
 0x18a   :  { %1299 = vmatpush.bf16.msra.mxu0 %v1954_v8 }
 0x18b   :  { %v896_v29 = vmul.f32 %v894_v6, %v891_v27  ;;  %v879_v36 = vadd.f32 %v872_v25, %v708_v28  ;;  %vm1959_vm1 = vcmp.ne.s32.totalorder %v1094_v46, 0  ;;  %v1207_v25 = vperm.slane %v28_v12, 2 }
 0x18c   :  { %vm1780_vm3 = vmpackc.low %vm1959_vm1, %vm1960_vm2 }
 0x18d   :  { %v901_v30 = vadd.f32 %v899_v14, %v896_v29  ;;  %v884_v31 = vadd.f32 %v881_v62, %v879_v36 }
 0x18e   :  { %1300 = vmatpush.bf16.msra.mxu0 %v1953_v59 }
 0x18f   :  { %905 = vst [vmem:[#allocation3 + $0x8] sm:$0xff] %v901_v30  ;;  %v888_v45 = vmul.f32 0.2, %v884_v31 }
 0x190   :  { %v709_v49 = vpop.f32.mrf.mxu3 }
 0x191   :  { %v892_v34 = vmax.f32 %v884_v31, %v888_v45  ;;  %v710_v35 = vadd.f32 %v709_v49, %v2289_v52 }
 0x192   :  { %1301 = vmatpush.bf16.msra.mxu0 %v1952_v61 }
 0x193   :  { %v897_v33 = vmul.f32 %v894_v6, %v892_v34  ;;  %v880_v37 = vadd.f32 %v874_v32, %v710_v35 }
 0x195   :  { %v902_v38 = vadd.f32 %v899_v14, %v897_v33  ;;  %v885_v39 = vadd.f32 %v881_v62, %v880_v37  ;;  %v1944_v62 = vld [vmem:[%s2410_s2 + $0x1e8] sm:$0xff]  ;;  %v11_v37 = vstv %s2413_s5 }
 0x196   :  { %v912_v47 = vld [vmem:[#allocation3 + $0x1] ss:$2 sm:$0xff]  ;;  %v908_v51 = vld [vmem:[#allocation3] ss:$2 sm:$0xff]  ;;  %1362 = vmatpush.bf16.msra.mxu1 %v1944_v62  ;;  %1302 = vmatpush.bf16.msra.mxu0 %v1951_v63  ;;  %12 = vst [vmem:[#allocation6] sm:$0x1] %v11_v37 }
 0x197   :  { %906 = vst [vmem:[#allocation3 + $0x10] sm:$0xff] %v902_v38  ;;  %v889_v40 = vmul.f32 0.2, %v885_v39  ;;  %v1077_v48 = vrot.slane %v912_v47, 7  ;;  %v29_v38 = vld [vmem:[%s2411_s3 + $0xc] sm:$0x7] }
 0x198   :  { %v1377_v46 = vperm.slane %v29_v38, 1 }
 0x199   :  { %v893_v41 = vmax.f32 %v885_v39, %v889_v40  ;;  %v1082_v57 = vsel %vm227_vm0, 0.0, %v1077_v48  ;;  %v1373_v39 = vperm.slane %v29_v38, 0 }
 0x19a   :  { %1363 = vmatpush.bf16.msra.mxu1 %v1943_v0  ;;  %1303 = vmatpush.bf16.msra.mxu0 %v1950_v1 }
 0x19b   :  { %v898_v42 = vmul.f32 %v894_v6, %v893_v41  ;;  %v1948_v6 = vld [vmem:[%s2410_s2 + $0x208] sm:$0xff] }
 0x19d   :  { %v903_v43 = vadd.f32 %v899_v14, %v898_v42 }
 0x19e   :  { %1364 = vmatpush.bf16.msra.mxu1 %v1942_v2  ;;  %1304 = vmatpush.bf16.msra.mxu0 %v1949_v3 }
 0x19f   :  { %907 = vst [vmem:[#allocation3 + $0x18] sm:$0xff] %v903_v43 }
 0x1a2   :  { %1365 = vmatpush.bf16.msra.mxu1 %v1941_v5  ;;  %1305 = vmatpush.bf16.msra.mxu0 %v1948_v6 }
 0x1a6   :  { %v914_v50 = vld [vmem:[#allocation3 + $0x11] ss:$2 sm:$0xff]  ;;  %v910_v52 = vld [vmem:[#allocation3 + $0x10] ss:$2 sm:$0xff]  ;;  %1366 = vmatpush.bf16.msra.mxu1 %v1940_v7  ;;  %1306 = vmatpush.bf16.msra.mxu0 %v1947_v9 }
 0x1a7   :  { %v933_v53 = vpack.c.bf16 %v914_v50, %v912_v47  ;;  %v1078_v54 = vrot.slane %v914_v50, 7  ;;  %v915_v55 = vpack.c.bf16 %v910_v52, %v908_v51 }
 0x1a9   :  { %1007 = vmatmul.bf16.vlgmr.msrb.gmra.mxu1 %v933_v53  ;;  %v1079_v56 = vsel %vm227_vm0, %v1077_v48, %v1078_v54  ;;  %1069 = vmatmul.bf16.vlgmr.msrb.gmra.mxu2 %v915_v55  ;;  %v1379_v48 = vperm.slane %v29_v38, 2  ;;  %v1961_v53 = vld [vmem:[%s2412_s4] ss:$0 sm:$0xff]  ;;  %vm1399_vm0 = vcmask 7168  }
 0x1aa   :  { %v1781_v4 = vpack.c.bf16 %v1079_v56, %v1082_v57  ;;  %1367 = vmatpush.bf16.msra.mxu1 %v1939_v10  ;;  %v1962_v56 = vld [vmem:[#allocation6] ss:$0 sm:$0xff] }
 0x1ac   :  { %1782 = vmatmul.msk.bf16.vlgmr.msra.gmra.mxu3 %vm1780_vm3, %v1781_v4 }
 0x226   :  { %v1008_v11 = vpop.f32.mrf.mxu1 }
 0x22c   :  { %v1070_v13 = vpop.f32.mrf.mxu2 }
 0x22d   :  { %v1071_v14 = vadd.f32 %v1070_v13, %v1008_v11 }
 0x22e   :  { %v1010_v19 = vpop.f32.mrf.mxu1 }
 0x22f   :  { %v1190_v16 = vpop.f32.mrf.mxu3 }
 0x230   :  { %v1195_v17 = vadd.f32 %v1190_v16, %v1071_v14 }
 0x232   :  { %v1198_v18 = vadd.f32 %v1197_v15, %v1195_v17 }
 0x234   :  { %v1200_v20 = vmul.f32 0.2, %v1198_v18  ;;  %v1072_v22 = vpop.f32.mrf.mxu2 }
 0x235   :  { %v1073_v23 = vadd.f32 %v1072_v22, %v1010_v19 }
 0x236   :  { %v1202_v24 = vmax.f32 %v1198_v18, %v1200_v20 }
 0x237   :  { %v1192_v26 = vpop.f32.mrf.mxu3 }
 0x238   :  { %v1205_v27 = vmul.f32 %v1204_v21, %v1202_v24  ;;  %v1196_v28 = vadd.f32 %v1192_v26, %v1073_v23 }
 0x23a   :  { %v1208_v29 = vadd.f32 %v1207_v25, %v1205_v27  ;;  %v1199_v36 = vadd.f32 %v1197_v15, %v1196_v28 }
 0x23c   :  { %1210 = vst [vmem:[#allocation4] sm:$0xff] %v1208_v29  ;;  %v1201_v30 = vmul.f32 0.2, %v1199_v36 }
 0x23e   :  { %v1203_v31 = vmax.f32 %v1199_v36, %v1201_v30 }
 0x240   :  { %v1206_v45 = vmul.f32 %v1204_v21, %v1203_v31 }
 0x242   :  { %v1209_v49 = vadd.f32 %v1207_v25, %v1206_v45 }
 0x244   :  { %1211 = vst [vmem:[#allocation4 + $0x8] sm:$0xff] %v1209_v49 }
 0x24b   :  { %v1214_v34 = vld [vmem:[#allocation4 + $0x1] ss:$2 sm:$0xff]  ;;  %v1212_v35 = vld [vmem:[#allocation4] ss:$2 sm:$0xff] }
 0x24c   :  { %v1233_v32 = vpack.c.bf16 %v1214_v34, %v1214_v34  ;;  %v1215_v33 = vpack.c.bf16 %v1212_v35, %v1212_v35 }
 0x24e   :  { %1307 = vmatmul.bf16.vlgmr.msra.gmra.mxu0 %v1233_v32  ;;  %1368 = vmatmul.bf16.vlgmr.msra.gmra.mxu1 %v1215_v33 }
 0x2cb   :  { %v1308_v40 = vpop.f32.mrf.mxu0  ;;  %v1369_v41 = vpop.f32.mrf.mxu1 }
 0x2cc   :  { %v1370_v42 = vadd.f32 %v1369_v41, %v1308_v40 }
 0x2ce   :  { %v1374_v43 = vadd.f32 %v1373_v39, %v1370_v42 }
 0x2d0   :  { %v1375_v44 = vmul.f32 0.2, %v1374_v43 }
 0x2d2   :  { %v1376_v47 = vmax.f32 %v1374_v43, %v1375_v44 }
 0x2d3   :  { %v1310_v50 = vpop.f32.mrf.mxu0  ;;  %v1371_v51 = vpop.f32.mrf.mxu1 }
 0x2d4   :  { %v1378_v52 = vmul.f32 %v1377_v46, %v1376_v47 }
 0x2d6   :  { %v1380_v54 = vadd.f32 %v1379_v48, %v1378_v52 }
 0x2d8   :  { %v1386_v55 = vmul.f32 %v1961_v53, %v1380_v54 }
 0x2da   :  { %1388 = vadd.xlane.f32.xlu0 %v1386_v55 }
 0x34d   :  { %v1389_v57 = vpop.xlane.xlu0 %1388 }
 0x34e   :  { %v1394_v4 = vadd.f32 %v1962_v56, %v1389_v57 }
 0x350   :  { %v1395_v8 = vmul.f32 0.5, %v1394_v4 }
 0x352   :  { %1963 = vtanh.f32 %v1395_v8 }
 0x358   :  { %v1964_v58 = vpop.eup %1963 }
 0x359   :  { %v1397_v59 = vadd.f32 1.0, %v1964_v58 }
 0x35b   :  { %v1398_v60 = vmul.f32 0.5, %v1397_v59 }
 0x35d   :  { %1400 = vst.msk [vmem:[%s2414_s6] sm:$0xff] %vm1399_vm0, %v1398_v60 }

</bundles_post_ra>
